<compile_context>
chip_gen: v6e
topology: v6e:2x2x1
jax: 0.10.0
libtpu: 0.0.40
codegen_flags: <defaults>
</compile_context>

<pallas_src>
import functools
import math

import jax
import jax.numpy as jnp
from jax import lax
from jax.experimental import pallas as pl
from jax.experimental.pallas import tpu as pltpu

GAMMA = 2                          # focal exponent (realized as one multiply)
LANE = 128
SUB_ROWS = 512                     # in-kernel chunk: ~256 KiB f32 temporaries
MAX_TILE_BYTES = 4 * 1024 * 1024   # per-input HBM tile (f32 -> 8192 rows)
VMEM_LIMIT_BYTES = 32 * 1024 * 1024
CLIP_LO = 1e-4
CLIP_HI = 1.0 - 1e-4


def _focal_elementwise(lg, tg):
    """Per-element focal loss in f32. Matches the PyTorch reference exactly:
    p = sigmoid(l); p = where(t>=0.5, p, 1-p); logp = -log(clip(p));
    loss = logp * (1-p)**2."""
    s = jnp.where(tg >= 0.5, lg, -lg)      # selected prob = sigmoid(s)
    e = jnp.exp(-s)                        # EUP
    p = 1.0 / (1.0 + e)                    # exact divide (1e-5 test tolerance;
                                           # pl.reciprocal(approx=True) is riskier)
    logp = -jnp.log(jnp.clip(p, CLIP_LO, CLIP_HI))   # EUP
    omp = 1.0 - p                          # unclipped, as in the reference
    return logp * (omp * omp)              # gamma == 2


def _focal_kernel(l_ref, t_ref, acc_ref, *, tile_rows, nb_valid, nb_per_split,
                  has_overhang):
    """Accumulate one (tile_rows, 128) tile into this core's resident (8, 128)
    f32 output block.  The output block index is constant along the
    'arbitrary' reduction axis, so it stays in VMEM across grid steps."""
    i = pl.program_id(1)

    @pl.when(i == 0)
    def _():
        acc_ref[...] = jnp.zeros_like(acc_ref)

    def accumulate(row_off, nrows):
        lg = l_ref[pl.ds(row_off, nrows), :].astype(jnp.float32)
        tg = t_ref[pl.ds(row_off, nrows), :].astype(jnp.float32)
        loss = _focal_elementwise(lg, tg)
        # Fold (nrows, 128) -> (8, 128) with vreg-aligned VALU adds; the single
        # expensive cross-lane reduce happens once, outside the kernel.
        acc_ref[...] += loss.reshape(-1, 8, LANE).sum(axis=0)

    def compute_tile():
        # Walk the big tile in fixed SUB_ROWS chunks so live elementwise
        # temporaries stay small even with multi-MiB BlockSpec tiles.
        nsub, rem = divmod(tile_rows, SUB_ROWS)
        if nsub > 0:
            def body(j, carry):
                accumulate(pl.multiple_of(j * SUB_ROWS, SUB_ROWS), SUB_ROWS)
                return carry
            lax.fori_loop(0, nsub, body, 0)
        if rem:
            accumulate(nsub * SUB_ROWS, rem)

    if has_overhang:
        # Odd block count with a 2-way split: the last grid step of one split
        # re-reads a clamped (valid) block; skip its accumulation.
        block = pl.program_id(0) * nb_per_split + i

        @pl.when(block < nb_valid)
        def _():
            compute_tile()
    else:
        compute_tile()


def _num_device_tensorcores():
    """2 for chips with two TensorCores per JAX device (v4/v5p megacore, v7x);
    1 otherwise (v5e/v6e)."""
    # TODO(synk): verify with xprof that the 'parallel' leading axis actually
    # shards across both TCs on v7x; if not, switch to pltpu.CORE_PARALLEL.
    try:
        kind = jax.devices()[0].device_kind.lower()
    except Exception:
        return 1
    return 2 if any(tag in kind for tag in ("v4", "v5p", "v7", "7x")) else 1


@functools.partial(jax.jit, static_argnames=("max_tile_bytes", "split"))
def focal_loss(logits, targets, max_tile_bytes=MAX_TILE_BYTES, split=None):
    """Equivalent of FocalLoss(gamma=2)(logits, targets) -> scalar f32."""
    assert logits.shape == targets.shape
    n = math.prod(logits.shape)

    # Keep original dtypes in HBM (bf16 stays bf16); cast happens in-kernel.
    l_flat = logits.reshape(-1)
    t_flat = targets.reshape(-1)

    itemsize = jnp.dtype(logits.dtype).itemsize
    max_tile_rows = max(8, (max_tile_bytes // (LANE * itemsize)) // 8 * 8)

    rows = n // LANE                       # number of full 128-wide rows
    if rows >= 8:
        # Split rows as evenly as possible into >= cdiv(rows, max) tiles so the
        # leftover handled by the jnp epilogue stays tiny.
        nb_target = -(-rows // max_tile_rows)
        tile_rows = max(8, (rows // nb_target) // 8 * 8)
        nb_full = rows // tile_rows        # fully in-bounds tiles only
    else:
        tile_rows, nb_full = 0, 0

    covered = nb_full * tile_rows * LANE   # elements handled by the kernel
    total = jnp.float32(0.0)

    if covered:
        # Zero-copy reshape when n is 128-aligned (the common case); otherwise
        # the prefix slice materializes a copy (only for ragged element counts).
        slab = rows * LANE
        l_pref = l_flat if slab == n else l_flat[:slab]
        t_pref = t_flat if slab == n else t_flat[:slab]
        l2d = l_pref.reshape(rows, LANE)
        t2d = t_pref.reshape(rows, LANE)

        nsplit = split if split is not None else _num_device_tensorcores()
        if nb_full < 2:
            nsplit = 1
        nb_per_split = -(-nb_full // nsplit)
        has_overhang = (nsplit * nb_per_split) != nb_full

        if has_overhang:
            def in_map(c, i):
                return (jnp.minimum(c * nb_per_split + i, nb_full - 1), 0)
        else:
            def in_map(c, i):
                return (c * nb_per_split + i, 0)

        kernel = functools.partial(
            _focal_kernel, tile_rows=tile_rows, nb_valid=nb_full,
            nb_per_split=nb_per_split, has_overhang=has_overhang)

        in_spec = pl.BlockSpec((tile_rows, LANE), in_map)

        partials = pl.pallas_call(
            kernel,
            out_shape=jax.ShapeDtypeStruct((nsplit * 8, LANE), jnp.float32),
            grid_spec=pltpu.PrefetchScalarGridSpec(
                num_scalar_prefetch=0,
                grid=(nsplit, nb_per_split),
                in_specs=[in_spec, in_spec],
                out_specs=pl.BlockSpec((8, LANE), lambda c, i: (c, 0)),
            ),
            compiler_params=pltpu.CompilerParams(
                dimension_semantics=("parallel", "arbitrary"),
                vmem_limit_bytes=VMEM_LIMIT_BYTES),
            cost_estimate=pl.CostEstimate(
                flops=14 * covered,
                transcendentals=3 * covered,
                bytes_accessed=2 * covered * itemsize + nsplit * 8 * LANE * 4),
        )(l2d, t2d)
        total = total + jnp.sum(partials, dtype=jnp.float32)

    if covered < n:
        # Tail (< one tile + 127 elements): tiny fused plain-XLA epilogue.
        # Also serves as the small-n path when n < 1024 (no kernel launch).
        lt = l_flat[covered:].astype(jnp.float32)
        tt = t_flat[covered:].astype(jnp.float32)
        total = total + jnp.sum(_focal_elementwise(lt, tt), dtype=jnp.float32)

    # Single tiny cross-lane reduce + scale outside the kernel.
    return (28.0 * total / n).astype(jnp.float32)


def _focal_loss_ref(logits, targets):
    l = logits.reshape(-1).astype(jnp.float32)
    t = targets.reshape(-1).astype(jnp.float32)
    p = jax.nn.sigmoid(l)
    p = jnp.where(t >= 0.5, p, 1.0 - p)
    logp = -jnp.log(jnp.clip(p, CLIP_LO, CLIP_HI))
    loss = logp * (1.0 - p) ** GAMMA
    return 28.0 * jnp.mean(loss)


if __name__ == "__main__":
    key = jax.random.PRNGKey(0)
    k1, k2, k3, k4, k5, k6, k7, k8 = jax.random.split(key, 8)

    # Primary small NCHW case: batch=2, channels=4, spatial=16x16 (kernel path).
    logits = jax.random.normal(k1, (2, 4, 16, 16), dtype=jnp.float32)
    targets = jax.random.bernoulli(k2, 0.5, (2, 4, 16, 16)).astype(jnp.float32)
    out = jax.block_until_ready(focal_loss(logits, targets))
    ref = _focal_loss_ref(logits, targets)
    assert jnp.allclose(out, ref, rtol=1e-5, atol=1e-5), (out, ref)

    # Ragged element count (not a multiple of 128): kernel prefix + jnp tail.
    logits_r = jax.random.normal(k3, (3, 5, 7, 11), dtype=jnp.float32)
    targets_r = jax.random.bernoulli(k4, 0.5, (3, 5, 7, 11)).astype(jnp.float32)
    out_r = jax.block_until_ready(focal_loss(logits_r, targets_r))
    ref_r = _focal_loss_ref(logits_r, targets_r)
    assert jnp.allclose(out_r, ref_r, rtol=1e-5, atol=1e-5), (out_r, ref_r)

    # Multi-block case: two 8192-row tiles -> exercises the in-kernel sub-chunk
    # loop and accumulation across grid steps.
    logits_b = jax.random.normal(k5, (8, 16, 128, 128), dtype=jnp.float32)
    targets_b = jax.random.bernoulli(
        k6, 0.5, (8, 16, 128, 128)).astype(jnp.float32)
    out_b = jax.block_until_ready(focal_loss(logits_b, targets_b))
    ref_b = _focal_loss_ref(logits_b, targets_b)
    assert jnp.allclose(out_b, ref_b, rtol=1e-5, atol=1e-5), (out_b, ref_b)

    # Forced 2-way split with an odd block count: exercises the clamped
    # index_map + pl.when overhang path used on 2-TensorCore chips.
    logits_s = jax.random.normal(k7, (2, 5, 64, 64), dtype=jnp.float32)
    targets_s = jax.random.bernoulli(k8, 0.5, (2, 5, 64, 64)).astype(jnp.float32)
    out_s = jax.block_until_ready(
        focal_loss(logits_s, targets_s, max_tile_bytes=64 * 1024, split=2))
    ref_s = _focal_loss_ref(logits_s, targets_s)
    assert jnp.allclose(out_s, ref_s, rtol=1e-5, atol=1e-5), (out_s, ref_s)

    print("KERNEL_OK")
</pallas_src>

<mosaic_0001>
module attributes {stable_mosaic.version = 11 : i64} {
  func.func @_focal_kernel(%arg0: i32, %arg1: i32, %arg2: memref<16x128xf32, #tpu.memory_space<vmem>>, %arg3: memref<16x128xf32, #tpu.memory_space<vmem>>, %arg4: memref<8x128xf32, #tpu.memory_space<vmem>>) attributes {dimension_semantics = [#tpu.dimension_semantics<parallel>, #tpu.dimension_semantics<arbitrary>], iteration_bounds = array<i64: 1, 1>, scalar_prefetch = 0 : i64, scratch_operands = 0 : i64, tpu.core_type = #tpu.core_type<tc>, window_params = [{transform_indices = @transform_0, window_bounds = array<i64: 16, 128>}, {transform_indices = @transform_1, window_bounds = array<i64: 16, 128>}, {transform_indices = @transform_2, window_bounds = array<i64: 8, 128>}]} {
    %c0_i32 = arith.constant 0 : i32
    %0 = arith.cmpi eq, %arg1, %c0_i32 : i32
    %1 = arith.extui %0 : i1 to i32
    %c0_i32_0 = arith.constant 0 : i32
    %2 = arith.cmpi ne, %1, %c0_i32_0 : i32
    scf.if %2 {
      %cst_17 = arith.constant 0.000000e+00 : f32
      %33 = vector.broadcast %cst_17 : f32 to vector<8x128xf32>
      %c0_18 = arith.constant 0 : index
      %c0_19 = arith.constant 0 : index
      %34 = vector.load %arg4[%c0_18, %c0_19] : memref<8x128xf32, #tpu.memory_space<vmem>>, vector<8x128xf32>
      tpu.vector_store %arg4[%c0_18, %c0_19], %33 {strides = array<i32>} : memref<8x128xf32, #tpu.memory_space<vmem>>, vector<8x128xf32>,
    } else {
    }
    %c0 = arith.constant 0 : index
    %c0_1 = arith.constant 0 : index
    %3 = vector.load %arg2[%c0, %c0_1] : memref<16x128xf32, #tpu.memory_space<vmem>>, vector<16x128xf32>
    %c0_2 = arith.constant 0 : index
    %c0_3 = arith.constant 0 : index
    %4 = vector.load %arg3[%c0_2, %c0_3] : memref<16x128xf32, #tpu.memory_space<vmem>>, vector<16x128xf32>
    %cst = arith.constant 5.000000e-01 : f32
    %5 = vector.broadcast %cst : f32 to vector<16x128xf32>
    %6 = arith.cmpf oge, %4, %5 : vector<16x128xf32>
    %cst_4 = arith.constant 0.000000e+00 : f32
    %7 = vector.broadcast %cst_4 : f32 to vector<16x128xf32>
    %8 = arith.subf %7, %3 : vector<16x128xf32>
    %9 = arith.select %6, %3, %8 : vector<16x128xi1>, vector<16x128xf32>
    %cst_5 = arith.constant 0.000000e+00 : f32
    %10 = vector.broadcast %cst_5 : f32 to vector<16x128xf32>
    %11 = arith.subf %10, %9 : vector<16x128xf32>
    %12 = math.exp %11 : vector<16x128xf32>
    %cst_6 = arith.constant 1.000000e+00 : f32
    %13 = vector.broadcast %cst_6 : f32 to vector<16x128xf32>
    %14 = arith.addf %13, %12 : vector<16x128xf32>
    %cst_7 = arith.constant 1.000000e+00 : f32
    %15 = vector.broadcast %cst_7 : f32 to vector<16x128xf32>
    %16 = arith.divf %15, %14 : vector<16x128xf32>
    %cst_8 = arith.constant 9.99999974E-5 : f32
    %cst_9 = arith.constant 0.999899983 : f32
    %17 = vector.broadcast %cst_8 : f32 to vector<16x128xf32>
    %18 = arith.maximumf %17, %16 : vector<16x128xf32>
    %19 = vector.broadcast %cst_9 : f32 to vector<16x128xf32>
    %20 = arith.minimumf %19, %18 : vector<16x128xf32>
    %21 = math.log %20 : vector<16x128xf32>
    %cst_10 = arith.constant 0.000000e+00 : f32
    %22 = vector.broadcast %cst_10 : f32 to vector<16x128xf32>
    %23 = arith.subf %22, %21 : vector<16x128xf32>
    %cst_11 = arith.constant 1.000000e+00 : f32
    %24 = vector.broadcast %cst_11 : f32 to vector<16x128xf32>
    %25 = arith.subf %24, %16 : vector<16x128xf32>
    %26 = arith.mulf %25, %25 : vector<16x128xf32>
    %27 = arith.mulf %23, %26 : vector<16x128xf32>
    %c0_12 = arith.constant 0 : index
    %c0_13 = arith.constant 0 : index
    %28 = vector.load %arg4[%c0_12, %c0_13] : memref<8x128xf32, #tpu.memory_space<vmem>>, vector<8x128xf32>
    %29 = vector.shape_cast %27 : vector<16x128xf32> to vector<2x8x128xf32>
    %cst_14 = arith.constant dense<0.000000e+00> : vector<8x128xf32>
    %30 = vector.multi_reduction <add>, %29, %cst_14 [0] : vector<2x8x128xf32> to vector<8x128xf32>
    %31 = arith.addf %28, %30 : vector<8x128xf32>
    %c0_15 = arith.constant 0 : index
    %c0_16 = arith.constant 0 : index
    %32 = vector.load %arg4[%c0_15, %c0_16] : memref<8x128xf32, #tpu.memory_space<vmem>>, vector<8x128xf32>
    tpu.vector_store %arg4[%c0_15, %c0_16], %31 {strides = array<i32>} : memref<8x128xf32, #tpu.memory_space<vmem>>, vector<8x128xf32>,
    return
  }
  func.func @transform_0(%arg0: i32, %arg1: i32) -> (i32, i32) {
    %c1_i32 = arith.constant 1 : i32
    %0 = arith.muli %arg0, %c1_i32 : i32
    %1 = arith.addi %0, %arg1 : i32
    %c0_i32 = arith.constant 0 : i32
    %c0_i32_0 = arith.constant 0 : i32
    return %1, %c0_i32 : i32, i32
  }
  func.func @transform_1(%arg0: i32, %arg1: i32) -> (i32, i32) {
    %c1_i32 = arith.constant 1 : i32
    %0 = arith.muli %arg0, %c1_i32 : i32
    %1 = arith.addi %0, %arg1 : i32
    %c0_i32 = arith.constant 0 : i32
    %c0_i32_0 = arith.constant 0 : i32
    return %1, %c0_i32 : i32, i32
  }
  func.func @transform_2(%arg0: i32, %arg1: i32) -> (i32, i32) {
    %c0_i32 = arith.constant 0 : i32
    %c0_i32_0 = arith.constant 0 : i32
    return %arg0, %c0_i32 : i32, i32
  }
}

</mosaic_0001>

<bundles_post_ra>
// kernel: focal_loss.1
= control target key start
LH: loop header
LB: loop body
LE: loop exit
PB: predicated region body
PF: predicated region fallthrough
CT: control target
= control target key end

     0   :  { %s161_s0 = inlined_call_operand.vmem [shape: f32[16,128], index: 0, kind: input, shape index: {}]   ;;  %s162_s1 = inlined_call_operand.vmem [shape: f32[16,128], index: 1, kind: input, shape index: {}]   ;;  %s163_s2 = inlined_call_operand.vmem [shape: f32[8,128], index: 2, kind: output, shape index: {}]  }
   0x1   :  { %v60_v0 = vld [vmem:[%s161_s0] sm:$0xff]  ;;  %v61_v1 = vld [vmem:[%s161_s0 + $0x8] sm:$0xff] }
   0x2   :  { %v62_v2 = vld [vmem:[%s162_s1] sm:$0xff]  ;;  %v63_v3 = vld [vmem:[%s162_s1 + $0x8] sm:$0xff]  ;;  %v66_v4 = vsub.f32 0.0, %v60_v0  ;;  %v67_v5 = vsub.f32 0.0, %v61_v1 }
   0x3   :  { %vm64_vm0 = vcmp.ge.f32.partialorder %v62_v2, 0.5  ;;  %vm65_vm1 = vcmp.ge.f32.partialorder %v63_v3, 0.5 }
   0x4   :  { %v68_v6 = vsel %vm64_vm0, %v60_v0, %v66_v4  ;;  %v69_v7 = vsel %vm65_vm1, %v61_v1, %v67_v5 }
   0x5   :  { %v70_v8 = vsub.f32 0.0, %v68_v6  ;;  %v71_v9 = vsub.f32 0.0, %v69_v7 }
   0x7   :  { %v72_v10 = vmul.f32 1.442695, %v70_v8  ;;  %v74_v11 = vmul.f32 1.442695, %v71_v9 }
   0x9   :  { %119 = vpow2.f32 %v72_v10 }
   0xa   :  { %121 = vpow2.f32 %v74_v11 }
  0x16   :  { %v120_v12 = vpop.eup %119 }
  0x17   :  { %v122_v13 = vpop.eup %121  ;;  %v76_v14 = vadd.f32 1.0, %v120_v12 }
  0x18   :  { %v77_v15 = vadd.f32 1.0, %v122_v13 }
  0x19   :  { %123 = vrcp.f32 %v76_v14 }
  0x1a   :  { %125 = vrcp.f32 %v77_v15 }
  0x26   :  { %v124_v16 = vpop.eup %123 }
  0x27   :  { %v126_v17 = vpop.eup %125  ;;  %v82_v18 = vmax.f32 %v124_v16, 0.0001  ;;  %v92_v22 = vsub.f32 1.0, %v124_v16 }
  0x28   :  { %v83_v19 = vmax.f32 %v126_v17, 0.0001  ;;  %v93_v23 = vsub.f32 1.0, %v126_v17 }
  0x29   :  { %v84_v20 = vmin.f32 %v82_v18, 0.9999  ;;  %v94_v27 = vmul.f32 %v92_v22, %v92_v22 }
  0x2a   :  { %v85_v21 = vmin.f32 %v83_v19, 0.9999  ;;  %v95_v29 = vmul.f32 %v93_v23, %v93_v23 }
  0x2b   :  { %127 = vlog2.f32 %v84_v20 }
  0x2c   :  { %129 = vlog2.f32 %v85_v21 }
  0x38   :  { %v128_v24 = vpop.eup %127 }
  0x39   :  { %v130_v25 = vpop.eup %129  ;;  %v87_v26 = vmul.f32 0.6931472, %v128_v24 }
  0x3a   :  { %v89_v28 = vmul.f32 0.6931472, %v130_v25 }
  0x3b   :  { %v90_v30 = vsub.f32 0.0, %v87_v26 }
  0x3c   :  { %v91_v31 = vsub.f32 0.0, %v89_v28 }
  0x3d   :  { %v96_v32 = vmul.f32 %v94_v27, %v90_v30 }
  0x3e   :  { %v97_v33 = vmul.f32 %v95_v29, %v91_v31 }
  0x40   :  { %v99_v34 = vadd.f32 %v97_v33, %v96_v32 }
  0x42   :  { %101 = vst [vmem:[%s163_s2] sm:$0xff] %v99_v34 }

</bundles_post_ra>
